<compile_context>
chip_gen: v6e
topology: v6e:2x2x1
jax: 0.10.0
libtpu: 0.0.40
codegen_flags: <defaults>
</compile_context>

<pallas_src>
import math

import jax
import jax.numpy as jnp
from jax.experimental import pallas as pl
from jax.experimental.pallas import tpu as pltpu


def _round_up(x, m):
    return ((x + m - 1) // m) * m


def _shift_scale_kernel(x_ref, shift_ref, inv_ref, o_ref):
    # x tile: (tb, td) in input dtype; params: (1, td) float32.
    x = x_ref[...].astype(jnp.float32)
    o_ref[...] = ((x - shift_ref[...]) * inv_ref[...]).astype(o_ref.dtype)


def _scale_kernel(x_ref, inv_ref, o_ref):
    x = x_ref[...].astype(jnp.float32)
    o_ref[...] = (x * inv_ref[...]).astype(o_ref.dtype)


def normalizer_forward(array, mean, variance, *, preserve_origin=False):
    """Pallas equivalent of Normalizer.forward.

    array:    (..., *dim)
    mean:     dim-shaped parameter
    variance: dim-shaped parameter
    """
    if array.size == 0:
        return array

    feat_shape = mean.shape
    D = int(math.prod(feat_shape)) if feat_shape else 1
    orig_shape = array.shape
    dtype = array.dtype
    itemsize = jnp.dtype(dtype).itemsize

    x = array.reshape(-1, D)
    B = x.shape[0]

    # ---- parameter prep (tiny, once, f32; kernel gets the rsqrt scale) ----
    mean_f32 = mean.reshape(D).astype(jnp.float32)
    var_f32 = variance.reshape(D).astype(jnp.float32)
    if preserve_origin:
        inv = jax.lax.rsqrt(var_f32 + mean_f32 * mean_f32)
        shift = None
    else:
        inv = jax.lax.rsqrt(var_f32)
        shift = mean_f32

    sublane = {4: 8, 2: 16, 1: 32}.get(itemsize, 8)
    target_tile_bytes = 4 << 20   # per x tile; x+out double-buffered ~= 16 MiB
    min_tile_bytes = 512 << 10    # floor when splitting for megacore

    # ---- lane-dense fold, only when it is free (no pad, fits budget) ----
    k = 1
    if D % 128 != 0:
        k_cand = math.lcm(D, 128) // D
        if (
            B % k_cand == 0
            and B >= k_cand
            and k_cand * D * itemsize * sublane <= target_tile_bytes
        ):
            k = k_cand
    D2 = k * D
    B2 = B // k
    x2 = x.reshape(B2, D2) if k > 1 else x  # contiguous reshape: no HBM copy

    inv2 = jnp.tile(inv, (k,)).reshape(1, D2)
    shift2 = None if shift is None else jnp.tile(shift, (k,)).reshape(1, D2)

    # ---- tile sizing ----
    row_bytes = max(D2 * itemsize, 1)
    if row_bytes * sublane <= target_tile_bytes:
        # Whole feature row per block.
        td = D2
        tb_budget = max(sublane, (target_tile_bytes // row_bytes) // sublane * sublane)
    else:
        # Huge feature dim: block the feature axis in 128-lane multiples.
        td = max(128, (target_tile_bytes // (sublane * itemsize)) // 128 * 128)
        tb_budget = sublane

    # Guarantee several batch-grid steps (v7x megacore), keep tiles >= ~512 KiB.
    min_rows = max(sublane, (min_tile_bytes // row_bytes) // sublane * sublane)
    tb_split = _round_up(pl.cdiv(B2, 4), sublane)
    tb = min(tb_budget, max(min_rows, tb_split))
    tb = max(sublane, min(tb, _round_up(B2, sublane)))

    grid = (pl.cdiv(B2, tb), pl.cdiv(D2, td))

    # ---- kernel / specs ----
    if preserve_origin:
        kernel = _scale_kernel
        param_arrays = [inv2]
    else:
        kernel = _shift_scale_kernel
        param_arrays = [shift2, inv2]

    in_specs = [pl.BlockSpec((tb, td), lambda i, j: (i, j))]
    for _ in param_arrays:
        in_specs.append(pl.BlockSpec((1, td), lambda i, j: (0, j)))

    cost = pl.CostEstimate(
        flops=(1 if preserve_origin else 2) * B2 * D2,
        transcendentals=0,
        bytes_accessed=2 * B2 * D2 * itemsize + len(param_arrays) * D2 * 4,
    )

    out2 = pl.pallas_call(
        kernel,
        out_shape=jax.ShapeDtypeStruct((B2, D2), dtype),
        grid_spec=pltpu.PrefetchScalarGridSpec(
            num_scalar_prefetch=0,
            grid=grid,
            in_specs=in_specs,
            out_specs=pl.BlockSpec((tb, td), lambda i, j: (i, j)),
        ),
        compiler_params=pltpu.CompilerParams(
            dimension_semantics=("parallel", "parallel"),
            vmem_limit_bytes=40 * 1024 * 1024,
        ),
        cost_estimate=cost,
    )(x2, *param_arrays)

    # No padding was ever added, so a plain (free) reshape restores the shape.
    return out2.reshape(orig_shape)


if __name__ == "__main__":
    key = jax.random.PRNGKey(0)
    k_x, k_m, k_v, k_x2, k_x3 = jax.random.split(key, 5)

    # Case 1: Normalizer(dim=(32,)) on a batch of 8 (lane-fold path, k=4).
    B, D = 8, 32
    x = jax.random.normal(k_x, (B, D), dtype=jnp.float32)
    mean = 0.1 * jax.random.normal(k_m, (D,), dtype=jnp.float32)
    variance = 1.0 + 0.5 * jax.random.uniform(k_v, (D,), dtype=jnp.float32)

    out = jax.block_until_ready(
        normalizer_forward(x, mean, variance, preserve_origin=False)
    )
    ref = (x - mean[None, :]) / jnp.sqrt(variance[None, :])
    assert jnp.allclose(out, ref, atol=1e-5, rtol=1e-5)

    out_po = jax.block_until_ready(
        normalizer_forward(x, mean, variance, preserve_origin=True)
    )
    ref_po = x / jnp.sqrt(variance[None, :] + mean[None, :] ** 2)
    assert jnp.allclose(out_po, ref_po, atol=1e-5, rtol=1e-5)

    # Case 2: batch 50 (not a multiple of the fold factor) -> unfolded path,
    # partial last batch block, zero pad/slice.
    x_odd = jax.random.normal(k_x2, (50, D), dtype=jnp.float32)
    out_odd = jax.block_until_ready(normalizer_forward(x_odd, mean, variance))
    ref_odd = (x_odd - mean[None, :]) / jnp.sqrt(variance[None, :])
    assert jnp.allclose(out_odd, ref_odd, atol=1e-5, rtol=1e-5)

    # Case 3: multi-dim feature dim=(4, 32) (D=128, already lane-aligned).
    dimf = (4, 32)
    x3 = jax.random.normal(k_x3, (6,) + dimf, dtype=jnp.float32)
    mean3 = 0.1 * jax.random.normal(k_m, dimf, dtype=jnp.float32)
    var3 = 1.0 + 0.5 * jax.random.uniform(k_v, dimf, dtype=jnp.float32)
    out3 = jax.block_until_ready(normalizer_forward(x3, mean3, var3))
    ref3 = (x3 - mean3[None]) / jnp.sqrt(var3[None])
    assert jnp.allclose(out3, ref3, atol=1e-5, rtol=1e-5)

    # TODO(synk): inverse()/update() (running-stat state mutation) are not part
    # of forward and are not implemented as kernels.
    print("KERNEL_OK")
</pallas_src>

<mosaic_0001>
module attributes {stable_mosaic.version = 11 : i64} {
  func.func @_shift_scale_kernel(%arg0: i32, %arg1: i32, %arg2: memref<8x128xf32, #tpu.memory_space<vmem>>, %arg3: memref<1x128xf32, #tpu.memory_space<vmem>>, %arg4: memref<1x128xf32, #tpu.memory_space<vmem>>, %arg5: memref<8x128xf32, #tpu.memory_space<vmem>>) attributes {dimension_semantics = [#tpu.dimension_semantics<parallel>, #tpu.dimension_semantics<parallel>], iteration_bounds = array<i64: 1, 1>, scalar_prefetch = 0 : i64, scratch_operands = 0 : i64, tpu.core_type = #tpu.core_type<tc>, window_params = [{transform_indices = @transform_0, window_bounds = array<i64: 8, 128>}, {transform_indices = @transform_1, window_bounds = array<i64: 1, 128>}, {transform_indices = @transform_2, window_bounds = array<i64: 1, 128>}, {transform_indices = @transform_3, window_bounds = array<i64: 8, 128>}]} {
    %c0 = arith.constant 0 : index
    %c0_0 = arith.constant 0 : index
    %0 = vector.load %arg2[%c0, %c0_0] : memref<8x128xf32, #tpu.memory_space<vmem>>, vector<8x128xf32>
    %c0_1 = arith.constant 0 : index
    %c0_2 = arith.constant 0 : index
    %1 = vector.load %arg3[%c0_1, %c0_2] : memref<1x128xf32, #tpu.memory_space<vmem>>, vector<1x128xf32>
    %2 = vector.broadcast %1 : vector<1x128xf32> to vector<8x128xf32>
    %3 = arith.subf %0, %2 : vector<8x128xf32>
    %c0_3 = arith.constant 0 : index
    %c0_4 = arith.constant 0 : index
    %4 = vector.load %arg4[%c0_3, %c0_4] : memref<1x128xf32, #tpu.memory_space<vmem>>, vector<1x128xf32>
    %5 = vector.broadcast %4 : vector<1x128xf32> to vector<8x128xf32>
    %6 = arith.mulf %3, %5 : vector<8x128xf32>
    %c0_5 = arith.constant 0 : index
    %c0_6 = arith.constant 0 : index
    %7 = vector.load %arg5[%c0_5, %c0_6] : memref<8x128xf32, #tpu.memory_space<vmem>>, vector<8x128xf32>
    tpu.vector_store %arg5[%c0_5, %c0_6], %6 {strides = array<i32>} : memref<8x128xf32, #tpu.memory_space<vmem>>, vector<8x128xf32>,
    return
  }
  func.func @transform_0(%arg0: i32, %arg1: i32) -> (i32, i32) {
    %c0_i32 = arith.constant 0 : i32
    return %arg0, %arg1 : i32, i32
  }
  func.func @transform_1(%arg0: i32, %arg1: i32) -> (i32, i32) {
    %c0_i32 = arith.constant 0 : i32
    %c0_i32_0 = arith.constant 0 : i32
    return %c0_i32, %arg1 : i32, i32
  }
  func.func @transform_2(%arg0: i32, %arg1: i32) -> (i32, i32) {
    %c0_i32 = arith.constant 0 : i32
    %c0_i32_0 = arith.constant 0 : i32
    return %c0_i32, %arg1 : i32, i32
  }
  func.func @transform_3(%arg0: i32, %arg1: i32) -> (i32, i32) {
    %c0_i32 = arith.constant 0 : i32
    return %arg0, %arg1 : i32, i32
  }
}

</mosaic_0001>

<bundles_post_ra>
// kernel: tpu_custom_call.1
= control target key start
LH: loop header
LB: loop body
LE: loop exit
PB: predicated region body
PF: predicated region fallthrough
CT: control target
= control target key end

     0   :  { %8 = vsyncpa [#allocation3], 0  ;;  %s150_s0 = inlined_call_operand.hbm [shape: f32[2,128], index: 0, kind: input, shape index: {}]   ;;  %s151_s1 = inlined_call_operand.vmem [shape: f32[1,128], index: 1, kind: input, shape index: {}]   ;;  %s152_s2 = inlined_call_operand.vmem [shape: f32[1,128], index: 2, kind: input, shape index: {}]   ;;  %s153_s3 = inlined_call_operand.hbm [shape: f32[2,128], index: 3, kind: output, shape index: {}]  }
   0x1   :  { %9 = vsyncpa [#allocation4], 0 }
   0x2   :  { %14 = vsyncadd [#allocation3], 96  ;;  %s114_s12 = smov [#allocation2]  }
   0x3   :  { %s15_s13 = sshll.u32 %s114_s12, 4  ;;  %s16_s13 = int_to_ptr.vmem [resolvable:$true] %s15_s13 }
   0x4   :  { %s78_s14 = scalar_lea.vmem %s16_s13, 32  ;;  %s82_s15 = scalar_lea.vmem %s16_s13, 128 }
   0x5   :  { %p79_p0 = scmp.ne.s32.totalorder %s16_s13, %s78_s14  ;;  %p83_p1 = scmp.lt.s32.totalorder %s16_s13, %s16_s13 }
   0x6   :  { %p84_p2 = scmp.lt.s32.totalorder %s82_s15, %s78_s14 }
   0x8   :  { %p85_p3 = por %p84_p2, %p83_p1 }
   0xa   :  { %p86_p4 = pnand %p85_p3, %p79_p0 }
   0xc   :  { %89 = shalt.err (!%p86_p4)
}
   0xd   :  { %s115_s16 = smov 32   ;;  %s116_s17 = smov 2  }
   0xe   :  { %21 = dma.hbm_to_vmem [thread:$0]  %s150_s0, 32, %s16_s13, [#allocation3], %s115_s16, %s115_s16, %s116_s17  }
   0xf   :  { %110 = dma.done.wait [#allocation3], 128  }
  0x10   :  { %111 = vsyncadd [#allocation3], 4294967168  ;;  %v29_v0 = vld [vmem:[#allocation2] sm:$0xff] }
  0x11   :  { %v64_v1 = vld [vmem:[%s151_s1] ss:$0 sm:$0xff] }
  0x12   :  { %v65_v2 = vld [vmem:[%s152_s2] ss:$0 sm:$0xff]  ;;  %v37_v3 = vsub.f32 %v29_v0, %v64_v1 }
  0x14   :  { %v45_v4 = vmul.f32 %v65_v2, %v37_v3 }
  0x16   :  { %46 = vst [vmem:[#allocation5] sm:$0xff] %v45_v4 }
  0x17   :  { %51 = vsyncadd [#allocation4], 96  ;;  %s117_s24 = smov [#allocation5]  }
  0x18   :  { %s52_s25 = sshll.u32 %s117_s24, 4  ;;  %s53_s25 = int_to_ptr.vmem [resolvable:$true] %s52_s25 }
  0x19   :  { %s90_s26 = scalar_lea.vmem %s53_s25, 32  ;;  %s94_s0 = scalar_lea.vmem %s53_s25, 128 }
  0x1a   :  { %p91_p5 = scmp.ne.s32.totalorder %s53_s25, %s90_s26  ;;  %p95_p6 = scmp.lt.s32.totalorder %s53_s25, %s53_s25 }
  0x1b   :  { %p96_p7 = scmp.lt.s32.totalorder %s94_s0, %s90_s26 }
  0x1d   :  { %p97_p8 = por %p96_p7, %p95_p6 }
  0x1f   :  { %p98_p9 = pnand %p97_p8, %p91_p5 }
  0x21   :  { %101 = shalt.err (!%p98_p9)
}
  0x22   :  { %58 = dma.vmem_to_hbm [thread:$0]  %s53_s25, 32, %s153_s3, [#allocation4], %s115_s16, %s115_s16, %s116_s17  }
  0x23   :  { %112 = dma.done.wait [#allocation4], 128  }
  0x24   :  { %113 = vsyncadd [#allocation4], 4294967168 }
  0x25   :  { %62 = vsyncpa [#allocation3], 1 }
  0x26   :  { %63 = vsyncpa [#allocation4], 1 }

</bundles_post_ra>
